<compile_context>
chip_gen: v7x
topology: tpu7x:2x2x1
jax: 0.10.0
libtpu: 0.0.40
codegen_flags: <defaults>
</compile_context>

<pallas_src>
import functools
import math

import jax
import jax.numpy as jnp
import numpy as np
from jax import lax
from jax.experimental import pallas as pl
from jax.experimental.pallas import tpu as pltpu

_NEG_INF = -1e30   # finite "-inf": keeps exp()/max NaN-free


@functools.lru_cache(maxsize=None)
def _vmem_limit_bytes():
    """Per-generation VMEM budget: ~3/4 of physical (96 MiB v5e/v6e, 48 MiB v7x)."""
    try:
        cap = int(pltpu.get_tpu_info().vmem_capacity_bytes)
    except Exception:
        cap = 64 * 1024 * 1024
    return int(max(32 * 1024 * 1024, min(cap * 3 // 4, 112 * 1024 * 1024)))


def _pick_tile(full, target, align):
    """Largest tile <= target that divides `full` and is a multiple of `align`
    (falls back to the full dimension, which BlockSpec always accepts)."""
    if full <= target:
        return full
    t = (target // align) * align
    while t >= align:
        if full % t == 0:
            return t
        t -= align
    return full


# ----------------------------------------------------------------------------
# Tiled linear kernels: o = x @ w (+ b)   (bf16 operands, f32 accumulation)
# ----------------------------------------------------------------------------
def _linear_kernel(x_ref, w_ref, o_ref, acc_ref):
    k = pl.program_id(2)

    @pl.when(k == 0)
    def _():
        acc_ref[...] = jnp.zeros(acc_ref.shape, jnp.float32)

    acc_ref[...] += jnp.dot(x_ref[...], w_ref[...],
                            preferred_element_type=jnp.float32)

    @pl.when(k == pl.num_programs(2) - 1)
    def _():
        o_ref[...] = acc_ref[...].astype(o_ref.dtype)


def _linear_bias_kernel(x_ref, w_ref, b_ref, o_ref, acc_ref):
    k = pl.program_id(2)

    @pl.when(k == 0)
    def _():
        acc_ref[...] = jnp.zeros(acc_ref.shape, jnp.float32)

    acc_ref[...] += jnp.dot(x_ref[...], w_ref[...],
                            preferred_element_type=jnp.float32)

    @pl.when(k == pl.num_programs(2) - 1)
    def _():
        # bias added exactly once, on the final K step
        o_ref[...] = (acc_ref[...] + b_ref[...]).astype(o_ref.dtype)


def pallas_linear(x, w, b=None, *, out_dtype=jnp.float32, tm=256, tn=256, tk=512):
    """x: [M, K], w: [K, N] (already transposed), optional b: [N] -> [M, N]."""
    M, K = x.shape
    K2, N = w.shape
    assert K == K2
    m_align = 16 if x.dtype == jnp.bfloat16 else 8   # bf16 sublane packing
    tm = _pick_tile(M, tm, m_align)
    tn = _pick_tile(N, tn, 128)
    tk = _pick_tile(K, tk, 128)
    grid = (M // tm, N // tn, K // tk)

    in_specs = [pl.BlockSpec((tm, tk), lambda i, j, k: (i, k)),
                pl.BlockSpec((tk, tn), lambda i, j, k: (k, j))]
    args = [x, w]
    kernel = _linear_kernel
    if b is not None:
        in_specs.append(pl.BlockSpec((1, tn), lambda i, j, k: (0, j)))
        args.append(b.reshape(1, N).astype(jnp.float32))
        kernel = _linear_bias_kernel

    return pl.pallas_call(
        kernel,
        out_shape=jax.ShapeDtypeStruct((M, N), out_dtype),
        grid=grid,
        in_specs=in_specs,
        out_specs=pl.BlockSpec((tm, tn), lambda i, j, k: (i, j)),
        scratch_shapes=[pltpu.VMEM((tm, tn), jnp.float32)],
        compiler_params=pltpu.CompilerParams(
            dimension_semantics=("parallel", "parallel", "arbitrary"),
            vmem_limit_bytes=_vmem_limit_bytes()),
    )(*args)


# ----------------------------------------------------------------------------
# In-place KV-cache slab scatter (input_output_aliases, manual DMA)
# ----------------------------------------------------------------------------
def _kv_append_kernel(new_ref, pos_ref, cache_ref, out_ref, sem):
    # out_ref is aliased with cache_ref: only the fresh [G, S, D] slab is
    # written; the rest of the cache stays in place in HBM.
    del cache_ref
    b = pl.program_id(0)
    seqlen = new_ref.shape[1]
    start = pos_ref[0]
    cp = pltpu.make_async_copy(
        new_ref, out_ref.at[b, :, pl.ds(start, seqlen), :], sem)
    cp.start()
    cp.wait()


def kv_cache_append(cache, new, pos):
    """Scatter new [B, G, S, D] into cache [max_B, G, max_S, D] at seq offset pos.
    Avoids the full-cache HBM copy of cache.at[...].set(...)."""
    B, G, S, D = new.shape
    return pl.pallas_call(
        _kv_append_kernel,
        out_shape=jax.ShapeDtypeStruct(cache.shape, cache.dtype),
        grid=(B,),
        in_specs=[
            pl.BlockSpec((None, G, S, D), lambda b: (b, 0, 0, 0)),
            pl.BlockSpec(memory_space=pltpu.SMEM),
            pl.BlockSpec(memory_space=pl.ANY),
        ],
        out_specs=pl.BlockSpec(memory_space=pl.ANY),
        scratch_shapes=[pltpu.SemaphoreType.DMA],
        input_output_aliases={2: 0},
        compiler_params=pltpu.CompilerParams(
            dimension_semantics=("arbitrary",)),
    )(new, pos, cache)


# ----------------------------------------------------------------------------
# KV-blocked online-softmax attention kernel (flash-style, GQA stacked)
# ----------------------------------------------------------------------------
def _flash_attn_kernel(scalars_ref, q_ref, k_ref, v_ref, o_ref,
                       m_sc, l_sc, acc_sc, *, scale):
    qi = pl.program_id(1)
    kv_i = pl.program_id(2)

    H, tq, D = q_ref.shape          # q tile: all heads, tq query rows
    G, kv_blk, _ = k_ref.shape      # un-repeated GQA KV heads
    n_rep = H // G
    R = n_rep * tq                  # MXU M dimension per group

    start_pos = scalars_ref[0]
    kv_len = scalars_ref[1]

    @pl.when(kv_i == 0)
    def _():
        m_sc[...] = jnp.full(m_sc.shape, _NEG_INF, jnp.float32)
        l_sc[...] = jnp.zeros(l_sc.shape, jnp.float32)
        acc_sc[...] = jnp.zeros(acc_sc.shape, jnp.float32)

    kv_start = kv_i * kv_blk
    q_base = start_pos + qi * tq

    # skip KV blocks fully above the causal diagonal or beyond the cache length
    block_needed = jnp.logical_and(kv_start <= q_base + (tq - 1),
                                   kv_start < kv_len)

    @pl.when(block_needed)
    def _():
        # additive causal + length mask, shared by every head of the q tile
        q_pos = q_base + lax.broadcasted_iota(jnp.int32, (n_rep, tq, kv_blk), 1)
        k_pos = kv_start + lax.broadcasted_iota(jnp.int32, (n_rep, tq, kv_blk), 2)
        mask = jnp.where((k_pos <= q_pos) & (k_pos < kv_len),
                         0.0, _NEG_INF).reshape(R, kv_blk)

        for g in range(G):          # static unroll over KV groups
            # GQA: stack the group's n_rep query heads onto the M dimension
            q_g = q_ref[g * n_rep:(g + 1) * n_rep].reshape(R, D)   # bf16
            # scores: contract last dims (no K-tile transpose)
            s = lax.dot_general(q_g, k_ref[g], (((1,), (1,)), ((), ())),
                                preferred_element_type=jnp.float32)
            s = s * scale + mask

            m_prev = m_sc[g]                                        # (R, 1)
            m_new = jnp.maximum(m_prev, jnp.max(s, axis=-1, keepdims=True))
            alpha = jnp.exp(m_prev - m_new)
            p = jnp.exp(s - m_new)            # masked columns underflow to 0
            l_sc[g] = alpha * l_sc[g] + jnp.sum(p, axis=-1, keepdims=True)
            acc_sc[g] = alpha * acc_sc[g] + jnp.dot(
                p.astype(jnp.bfloat16), v_ref[g],
                preferred_element_type=jnp.float32)
            m_sc[g] = m_new

    @pl.when(kv_i == pl.num_programs(2) - 1)
    def _():
        # finalize into the lane-dense resident (tq, H*D) output block; the
        # per-head column writes hit VMEM only, HBM sees one full-width store.
        for g in range(G):
            inv_l = pl.reciprocal(l_sc[g], approx=True)             # EUP slot
            out_g = (acc_sc[g] * inv_l).astype(o_ref.dtype)         # (R, D)
            for r in range(n_rep):
                h = g * n_rep + r
                o_ref[:, h * D:(h + 1) * D] = out_g[r * tq:(r + 1) * tq]


def pallas_flash_attention(q, k_cache, v_cache, *, start_pos, kv_len,
                           q_block_target=256, kv_block_target=512):
    """q: [B, H, S, D] bf16; k_cache/v_cache: [max_B, G, max_S, D] bf16
    (un-repeated GQA cache).  Returns [B, S, H*D] bf16 (lane-dense)."""
    B, H, S, D = q.shape
    G, max_s = k_cache.shape[1], k_cache.shape[2]

    tq = _pick_tile(S, q_block_target, 16)
    kv_blk = _pick_tile(max_s, kv_block_target, 16)
    num_q = S // tq
    num_kv = max_s // kv_blk   # static: no recompile as start_pos / kv_len move

    scalars = jnp.array([start_pos, kv_len], jnp.int32)
    kern = functools.partial(_flash_attn_kernel, scale=1.0 / math.sqrt(D))

    grid_spec = pltpu.PrefetchScalarGridSpec(
        num_scalar_prefetch=1,
        grid=(B, num_q, num_kv),
        in_specs=[
            pl.BlockSpec((None, H, tq, D), lambda b, qi, kv, sc: (b, 0, qi, 0)),
            pl.BlockSpec((None, G, kv_blk, D), lambda b, qi, kv, sc: (b, 0, kv, 0)),
            pl.BlockSpec((None, G, kv_blk, D), lambda b, qi, kv, sc: (b, 0, kv, 0)),
        ],
        out_specs=pl.BlockSpec((None, tq, H * D), lambda b, qi, kv, sc: (b, qi, 0)),
        scratch_shapes=[
            pltpu.VMEM((G, (H // G) * tq, 1), jnp.float32),   # running max
            pltpu.VMEM((G, (H // G) * tq, 1), jnp.float32),   # running denominator
            pltpu.VMEM((G, (H // G) * tq, D), jnp.float32),   # running numerator
        ],
    )
    return pl.pallas_call(
        kern,
        out_shape=jax.ShapeDtypeStruct((B, S, H * D), jnp.bfloat16),
        grid_spec=grid_spec,
        compiler_params=pltpu.CompilerParams(
            dimension_semantics=("parallel", "parallel", "arbitrary"),
            vmem_limit_bytes=_vmem_limit_bytes()),
    )(scalars, q, k_cache, v_cache)


# ----------------------------------------------------------------------------
# Glue (rotary embeddings) in plain JAX
# ----------------------------------------------------------------------------
def precompute_freqs_cis(dim, end, theta=10000.0):
    freqs = 1.0 / (
        theta ** (jnp.arange(0, dim, 2)[: dim // 2].astype(jnp.float32) / dim))
    t = jnp.arange(end, dtype=jnp.float32)
    angles = jnp.outer(t, freqs)              # (end, dim//2)
    return jnp.cos(angles), jnp.sin(angles)


def apply_rotary_emb(xq, xk, cos, sin):
    # TODO(synk): fuse RoPE into the QKV projection kernel (pltpu.roll swizzle).
    def rot(x):
        xf = x.astype(jnp.float32)
        xr, xi = xf[..., 0::2], xf[..., 1::2]
        c = cos[None, :, None, :]
        s = sin[None, :, None, :]
        return jnp.stack([xr * c - xi * s, xr * s + xi * c], axis=-1).reshape(x.shape)

    return rot(xq), rot(xk)


def repeat_kv(x, n_rep):
    bz, seqlen, n_kv_heads, head_dim = x.shape
    if n_rep == 1:
        return x
    return jnp.broadcast_to(
        x[:, :, :, None, :], (bz, seqlen, n_kv_heads, n_rep, head_dim)
    ).reshape(bz, seqlen, n_kv_heads * n_rep, head_dim)


class Attention:
    """Functional JAX/Pallas port of the PyTorch Attention module."""

    def __init__(self, key, dim, n_heads, n_kv_heads=None,
                 max_batch_size=2, max_seq_len=32, kv_block=512):
        self.n_kv_heads = n_heads if n_kv_heads is None else n_kv_heads
        self.n_local_heads = n_heads
        self.n_rep = self.n_local_heads // self.n_kv_heads
        self.head_dim = dim // n_heads
        self.dim = dim
        self.kv_block = kv_block

        H, G, D = self.n_local_heads, self.n_kv_heads, self.head_dim
        k0, k1, k2, k3, k4 = jax.random.split(key, 5)
        s = 0.02
        # weights stored transposed [in, out] so y = x @ W (+ b), matching nn.Linear
        self.wq = s * jax.random.normal(k0, (dim, H * D), jnp.float32)
        self.wk = s * jax.random.normal(k1, (dim, G * D), jnp.float32)
        self.wv = s * jax.random.normal(k2, (dim, G * D), jnp.float32)
        self.wo = s * jax.random.normal(k3, (H * D, dim), jnp.float32)
        self.bo = s * jax.random.normal(k4, (dim,), jnp.float32)

        # fused QKV weight: one GEMM, one HBM pass over the activations
        self.wqkv_bf16 = jnp.concatenate([self.wq, self.wk, self.wv],
                                         axis=1).astype(jnp.bfloat16)
        self.wo_bf16 = self.wo.astype(jnp.bfloat16)

        # KV cache: bf16, un-repeated GQA heads, head-major [max_B, G, max_S, D]
        self.cache_k = jnp.zeros((max_batch_size, G, max_seq_len, D), jnp.bfloat16)
        self.cache_v = jnp.zeros_like(self.cache_k)

    def forward(self, x, start_pos, cos, sin):
        bz, seqlen, _ = x.shape
        H, G, D = self.n_local_heads, self.n_kv_heads, self.head_dim

        # fused, bias-free Q/K/V projection; bf16 output (no extra cast pass)
        x2d = x.reshape(bz * seqlen, self.dim).astype(jnp.bfloat16)
        qkv = pallas_linear(x2d, self.wqkv_bf16, out_dtype=jnp.bfloat16)
        xq = qkv[:, :H * D].reshape(bz, seqlen, H, D)
        xk = qkv[:, H * D:(H + G) * D].reshape(bz, seqlen, G, D)
        xv = qkv[:, (H + G) * D:].reshape(bz, seqlen, G, D)

        xq, xk = apply_rotary_emb(
            xq, xk, cos[start_pos:start_pos + seqlen],
            sin[start_pos:start_pos + seqlen])

        # in-place (aliased) slab scatter into the bf16 head-major cache.
        # TODO(synk): under jit, donate the caches so the alias is truly zero-copy.
        pos = jnp.array([start_pos], jnp.int32)
        new_k = jnp.transpose(xk, (0, 2, 1, 3)).astype(jnp.bfloat16)   # (B, G, S, D)
        new_v = jnp.transpose(xv, (0, 2, 1, 3)).astype(jnp.bfloat16)
        self.cache_k = kv_cache_append(self.cache_k, new_k, pos)
        self.cache_v = kv_cache_append(self.cache_v, new_v, pos)

        q = jnp.transpose(xq, (0, 2, 1, 3)).astype(jnp.bfloat16)       # (B, H, S, D)
        attn = pallas_flash_attention(
            q, self.cache_k, self.cache_v,
            start_pos=start_pos, kv_len=start_pos + seqlen,
            kv_block_target=self.kv_block)                 # (B, S, H*D) bf16

        # output is already in the transpose(1,2).view(B,S,H*D) layout -> wo GEMM
        y = pallas_linear(attn.reshape(bz * seqlen, H * D), self.wo_bf16, self.bo)
        return y.reshape(bz, seqlen, self.dim)


# ----------------------------------------------------------------------------
# Pure-JAX f32 reference (mirrors the PyTorch module, cache in [B, S, G, D])
# ----------------------------------------------------------------------------
def make_causal_mask(seqlen, start_pos):
    mask = jnp.full((seqlen, seqlen), float("-inf"), jnp.float32)
    mask = jnp.triu(mask, k=1)
    if start_pos > 0:
        mask = jnp.concatenate(
            [jnp.zeros((seqlen, start_pos), jnp.float32), mask], axis=1)
    return mask[None, None]   # (1, 1, S, start_pos + S)


def reference_forward(attn, x, start_pos, cos, sin, cache_k, cache_v):
    bz, seqlen, _ = x.shape
    H, G, D = attn.n_local_heads, attn.n_kv_heads, attn.head_dim
    xq = (x @ attn.wq).reshape(bz, seqlen, H, D)
    xk = (x @ attn.wk).reshape(bz, seqlen, G, D)
    xv = (x @ attn.wv).reshape(bz, seqlen, G, D)
    xq, xk = apply_rotary_emb(xq, xk,
                              cos[start_pos:start_pos + seqlen],
                              sin[start_pos:start_pos + seqlen])
    cache_k = cache_k.at[:bz, start_pos:start_pos + seqlen].set(xk)
    cache_v = cache_v.at[:bz, start_pos:start_pos + seqlen].set(xv)
    keys = repeat_kv(cache_k[:bz, :start_pos + seqlen], attn.n_rep)
    values = repeat_kv(cache_v[:bz, :start_pos + seqlen], attn.n_rep)
    q = jnp.transpose(xq, (0, 2, 1, 3))
    k = jnp.transpose(keys, (0, 2, 1, 3))
    v = jnp.transpose(values, (0, 2, 1, 3))
    scores = jnp.einsum("bhqd,bhkd->bhqk", q, k) / math.sqrt(D)
    scores = scores + make_causal_mask(seqlen, start_pos)
    probs = jax.nn.softmax(scores.astype(jnp.float32), axis=-1)
    out = jnp.einsum("bhqk,bhkd->bhqd", probs, v)
    out = jnp.transpose(out, (0, 2, 1, 3)).reshape(bz, seqlen, -1)
    return out @ attn.wo + attn.bo, cache_k, cache_v


# ----------------------------------------------------------------------------
if __name__ == "__main__":
    # small shapes consistent with the module: head_dim=16, GQA with n_rep=2
    B, S, DIM, NH, NKV = 2, 8, 64, 4, 2
    MAX_B, MAX_S = 2, 32

    key = jax.random.PRNGKey(0)
    kx1, kx2, kx3, kw = jax.random.split(key, 4)
    xs = [jax.random.normal(k, (B, S, DIM), jnp.float32) for k in (kx1, kx2, kx3)]

    attn = Attention(kw, dim=DIM, n_heads=NH, n_kv_heads=NKV,
                     max_batch_size=MAX_B, max_seq_len=MAX_S, kv_block=16)
    cos, sin = precompute_freqs_cis(DIM // NH, MAX_S * 2)

    ref_ck = jnp.zeros((MAX_B, MAX_S, NKV, DIM // NH), jnp.float32)
    ref_cv = jnp.zeros_like(ref_ck)

    # three calls: prefill (KV block 1 skipped), a cached step inside block 0,
    # and a step whose KV span crosses two blocks (exercises the online softmax,
    # the causal/length block skip, GQA, and the aliased cache scatter).
    for step, x in enumerate(xs):
        start = step * S
        out = jax.block_until_ready(attn.forward(x, start, cos, sin))
        ref, ref_ck, ref_cv = reference_forward(attn, x, start, cos, sin,
                                                ref_ck, ref_cv)
        np.testing.assert_allclose(np.asarray(out), np.asarray(ref),
                                   rtol=2e-2, atol=2e-2)
        assert out.shape == (B, S, DIM)
        assert bool(jnp.all(jnp.isfinite(out)))

    print("KERNEL_OK")
</pallas_src>

<mosaic_0001>
module attributes {stable_mosaic.version = 11 : i64} {
  func.func @_linear_kernel(%arg0: i32, %arg1: i32, %arg2: i32, %arg3: memref<16x64xbf16, #tpu.memory_space<vmem>>, %arg4: memref<64x128xbf16, #tpu.memory_space<vmem>>, %arg5: memref<16x128xbf16, #tpu.memory_space<vmem>>, %arg6: memref<16x128xf32, #tpu.memory_space<vmem>>) attributes {dimension_semantics = [#tpu.dimension_semantics<parallel>, #tpu.dimension_semantics<parallel>, #tpu.dimension_semantics<arbitrary>], iteration_bounds = array<i64: 1, 1, 1>, scalar_prefetch = 0 : i64, scratch_operands = 1 : i64, tpu.core_type = #tpu.core_type<tc>, window_params = [{transform_indices = @transform_0, window_bounds = array<i64: 16, 64>}, {transform_indices = @transform_1, window_bounds = array<i64: 64, 128>}, {transform_indices = @transform_2, window_bounds = array<i64: 16, 128>}]} {
    %c0_i32 = arith.constant 0 : i32
    %0 = arith.cmpi eq, %arg2, %c0_i32 : i32
    %1 = arith.extui %0 : i1 to i32
    %c0_i32_0 = arith.constant 0 : i32
    %2 = arith.cmpi ne, %1, %c0_i32_0 : i32
    scf.if %2 {
      %cst_10 = arith.constant 0.000000e+00 : f32
      %12 = vector.broadcast %cst_10 : f32 to vector<16x128xf32>
      %c0_11 = arith.constant 0 : index
      %c0_12 = arith.constant 0 : index
      %13 = vector.load %arg6[%c0_11, %c0_12] : memref<16x128xf32, #tpu.memory_space<vmem>>, vector<16x128xf32>
      tpu.vector_store %arg6[%c0_11, %c0_12], %12 {strides = array<i32>} : memref<16x128xf32, #tpu.memory_space<vmem>>, vector<16x128xf32>,
    } else {
    }
    %c0 = arith.constant 0 : index
    %c0_1 = arith.constant 0 : index
    %3 = vector.load %arg6[%c0, %c0_1] : memref<16x128xf32, #tpu.memory_space<vmem>>, vector<16x128xf32>
    %c0_2 = arith.constant 0 : index
    %c0_3 = arith.constant 0 : index
    %4 = vector.load %arg3[%c0_2, %c0_3] : memref<16x64xbf16, #tpu.memory_space<vmem>>, vector<16x64xbf16>
    %c0_4 = arith.constant 0 : index
    %c0_5 = arith.constant 0 : index
    %5 = vector.load %arg4[%c0_4, %c0_5] : memref<64x128xbf16, #tpu.memory_space<vmem>>, vector<64x128xbf16>
    %cst = arith.constant dense<0.000000e+00> : vector<16x128xf32>
    %6 = tpu.matmul %4, %5, %cst {dimension_numbers = #tpu.dot_dimension_numbers<[1], [0], [0], [1], [0, 0, 1, 1], [], []>} : vector<16x64xbf16>, vector<64x128xbf16>, vector<16x128xf32> -> vector<16x128xf32>
    %7 = arith.addf %3, %6 : vector<16x128xf32>
    %c0_6 = arith.constant 0 : index
    %c0_7 = arith.constant 0 : index
    %8 = vector.load %arg6[%c0_6, %c0_7] : memref<16x128xf32, #tpu.memory_space<vmem>>, vector<16x128xf32>
    tpu.vector_store %arg6[%c0_6, %c0_7], %7 {strides = array<i32>} : memref<16x128xf32, #tpu.memory_space<vmem>>, vector<16x128xf32>,
    %c0_i32_8 = arith.constant 0 : i32
    %9 = arith.cmpi eq, %arg2, %c0_i32_8 : i32
    %10 = arith.extui %9 : i1 to i32
    %c0_i32_9 = arith.constant 0 : i32
    %11 = arith.cmpi ne, %10, %c0_i32_9 : i32
    scf.if %11 {
      %c0_10 = arith.constant 0 : index
      %c0_11 = arith.constant 0 : index
      %12 = vector.load %arg6[%c0_10, %c0_11] : memref<16x128xf32, #tpu.memory_space<vmem>>, vector<16x128xf32>
      %13 = arith.truncf %12 : vector<16x128xf32> to vector<16x128xbf16>
      %c0_12 = arith.constant 0 : index
      %c0_13 = arith.constant 0 : index
      %14 = vector.load %arg5[%c0_12, %c0_13] : memref<16x128xbf16, #tpu.memory_space<vmem>>, vector<16x128xbf16>
      tpu.vector_store %arg5[%c0_12, %c0_13], %13 {strides = array<i32>} : memref<16x128xbf16, #tpu.memory_space<vmem>>, vector<16x128xbf16>,
    } else {
    }
    return
  }
  func.func @transform_0(%arg0: i32, %arg1: i32, %arg2: i32) -> (i32, i32) {
    %c0_i32 = arith.constant 0 : i32
    return %arg0, %arg2 : i32, i32
  }
  func.func @transform_1(%arg0: i32, %arg1: i32, %arg2: i32) -> (i32, i32) {
    %c0_i32 = arith.constant 0 : i32
    return %arg2, %arg1 : i32, i32
  }
  func.func @transform_2(%arg0: i32, %arg1: i32, %arg2: i32) -> (i32, i32) {
    %c0_i32 = arith.constant 0 : i32
    return %arg0, %arg1 : i32, i32
  }
}

</mosaic_0001>

<bundles_post_ra>
// kernel: tpu_custom_call.1
= control target key start
LH: loop header
LB: loop body
LE: loop exit
PB: predicated region body
PF: predicated region fallthrough
CT: control target
= control target key end

     0   :  { %7 = vsyncpa [#allocation4], 0  ;;  %s353_s0 = inlined_call_operand.hbm [shape: bf16[16,64], index: 0, kind: input, shape index: {}]   ;;  %s354_s1 = inlined_call_operand.hbm [shape: bf16[64,128], index: 1, kind: input, shape index: {}]   ;;  %s355_s2 = inlined_call_operand.hbm [shape: bf16[16,128], index: 2, kind: output, shape index: {}]  }
   0x1   :  { %8 = vsyncpa [#allocation7], 0 }
   0x2   :  { %9 = vsyncpa [#allocation5], 0  ;;  %s286_s9 = smov [#allocation3]   ;;  %s214_s13 = scalar_lea.hbm %s353_s0, 128 }
   0x3   :  { %s15_s10 = sshll.u32 %s286_s9, 4  ;;  %p215_p0 = scmp.ne.s32.totalorder %s353_s0, %s214_s13  ;;  %s16_s10 = int_to_ptr.vmem [resolvable:$true] %s15_s10 }
   0x4   :  { %p218_p1 = scmp.lt.u32.totalorder %s214_s13, %s353_s0 }
   0x6   :  { %p220_p2 = pnand %p218_p1, %p215_p0 }
   0x8   :  { %223 = shalt.err (!%p220_p2)
}
   0x9   :  { %s224_s18 = scalar_lea.vmem %s16_s10, 128  ;;  %p229_p4 = scmp.lt.s32.totalorder %s16_s10, %s16_s10 }
   0xa   :  { %p225_p3 = scmp.ne.s32.totalorder %s16_s10, %s224_s18  ;;  %p230_p5 = scmp.lt.s32.totalorder %s224_s18, %s224_s18 }
   0xc   :  { %p231_p6 = por %p230_p5, %p229_p4 }
   0xe   :  { %p232_p7 = pnand %p231_p6, %p225_p3 }
  0x10   :  { %235 = shalt.err (!%p232_p7)
}
  0x11   :  { %s287_s19 = smov 64   ;;  %s288_s20 = smov 4  }
  0x12   :  { %21 = dma.hbm_to_vmem [thread:$0]  %s353_s0, 128, %s16_s10, [#allocation4], %s287_s19, %s287_s19, %s288_s20  }
  0x13   :  { %s289_s23 = smov [#allocation6]   ;;  %s236_s27 = scalar_lea.hbm %s354_s1, 512 }
  0x14   :  { %s27_s24 = sshll.u32 %s289_s23, 4  ;;  %p237_p8 = scmp.ne.s32.totalorder %s354_s1, %s236_s27  ;;  %s28_s24 = int_to_ptr.vmem [resolvable:$true] %s27_s24 }
  0x15   :  { %p240_p9 = scmp.lt.u32.totalorder %s236_s27, %s354_s1 }
  0x17   :  { %p242_p10 = pnand %p240_p9, %p237_p8 }
  0x19   :  { %245 = shalt.err (!%p242_p10)
}
  0x1a   :  { %s246_s4 = scalar_lea.vmem %s28_s24, 512  ;;  %p251_p12 = scmp.lt.s32.totalorder %s28_s24, %s28_s24 }
  0x1b   :  { %p247_p11 = scmp.ne.s32.totalorder %s28_s24, %s246_s4  ;;  %p252_p13 = scmp.lt.s32.totalorder %s246_s4, %s246_s4 }
  0x1d   :  { %p253_p0 = por %p252_p13, %p251_p12 }
  0x1f   :  { %p254_p1 = pnand %p253_p0, %p247_p11 }
  0x21   :  { %257 = shalt.err (!%p254_p1)
}
  0x22   :  { %33 = dma.hbm_to_vmem [thread:$0]  %s354_s1, 512, %s28_s24, [#allocation7], %s287_s19, %s287_s19, %s288_s20  }
  0x23   :  { %280 = dma.done.wait [#allocation4], 128  }
  0x24   :  { %281 = vsyncadd [#allocation4], 4294967168 }
  0x25   :  { %282 = dma.done.wait [#allocation7], 512  }
  0x26   :  { %283 = vsyncadd [#allocation7], 4294966784  ;;  %v290_v0 = vmov 0.0   ;;  %vm291_vm0 = vmmov 0   ;;  %v209_v1 = vld [vmem:[#allocation6] sm:$0xff]   ;;  %v210_v2 = vld [vmem:[#allocation6 + $0x8] sm:$0xff]  }
  0x27   :  { %190 = vmatprep.subr.bf16.mxu0 %v290_v0  ;;  %198 = vmatprep.mubr.msk.bf16.mxu0 %vm291_vm0, %v290_v0  ;;  %v211_v3 = vld [vmem:[#allocation6 + $0x10] sm:$0xff]   ;;  %v212_v4 = vld [vmem:[#allocation6 + $0x18] sm:$0xff]   ;;  %vm88_vm1 = vcmask 523264   ;;  %s292_s1 = smov [#allocation8]  }
  0x28   :  { %191 = vmatpush3.bf16.msra.mxu0 %v209_v1  ;;  %v213_v5 = vld [vmem:[#allocation3] sm:$0xff]   ;;  %s157_s6 = sshll.u32 %s292_s1, 4  ;;  %s158_s6 = int_to_ptr.vmem [resolvable:$true] %s157_s6 }
  0x29   :  { %192 = vmatprep.subr.bf16.mxu0 %v290_v0  ;;  %s258_s7 = scalar_lea.vmem %s158_s6, 128  ;;  %p263_p3 = scmp.lt.s32.totalorder %s158_s6, %s158_s6 }
  0x2a   :  { %p259_p2 = scmp.ne.s32.totalorder %s158_s6, %s258_s7  ;;  %p264_p4 = scmp.lt.s32.totalorder %s258_s7, %s258_s7 }
  0x2c   :  { %193 = vmatpush3.bf16.msra.mxu0 %v210_v2  ;;  %p265_p5 = por %p264_p4, %p263_p3 }
  0x2d   :  { %194 = vmatprep.subr.bf16.mxu0 %v290_v0 }
  0x2e   :  { %p266_p6 = pnand %p265_p5, %p259_p2 }
  0x30   :  { %195 = vmatpush3.bf16.msra.mxu0 %v211_v3 }
  0x31   :  { %196 = vmatprep.subr.bf16.mxu0 %v290_v0 }
  0x34   :  { %197 = vmatpush3.bf16.msra.mxu0 %v212_v4 }
  0x37   :  { %199 = vmatmul.mubr.msk.bf16.vlgmr.msra.gmra.mrb[0].mxu0 %vm88_vm1, %v213_v5 }
 0x10a   :  { %v126_v6 = vpop.f32.mrb[0].mxu0 }
 0x10b   :  { %v200_v7 = vpop.f32.mrb[1].mxu0 }
 0x10c   :  { %v129_v8 = vpop.f32.mrb[2].mxu0 }
 0x10d   :  { %v183_v9 = vpack.c.bf16 %v129_v8, %v126_v6  ;;  %v201_v10 = vpop.f32.mrb[3].mxu0 }
 0x10f   :  { %184 = vst [vmem:[#allocation8] sm:$0xff] %v183_v9  }
 0x110   :  { %269 = shalt.err (!%p266_p6)
}
 0x111   :  { %s270_s10 = scalar_lea.hbm %s355_s2, 128 }
 0x112   :  { %p271_p7 = scmp.ne.s32.totalorder %s355_s2, %s270_s10  ;;  %p274_p8 = scmp.lt.u32.totalorder %s270_s10, %s355_s2 }
 0x114   :  { %p276_p9 = pnand %p274_p8, %p271_p7 }
 0x116   :  { %279 = shalt.err (!%p276_p9)
}
 0x117   :  { %163 = dma.vmem_to_hbm [thread:$0]  %s158_s6, 128, %s355_s2, [#allocation5], %s287_s19, %s287_s19, %s288_s20  }
 0x118   :  { %284 = dma.done.wait [#allocation5], 128  }
 0x119   :  { %285 = vsyncadd [#allocation5], 4294967168 }
 0x11a   :  { %167 = vsyncpa [#allocation4], 1 }
 0x11b   :  { %168 = vsyncpa [#allocation7], 1 }
 0x11c   :  { %169 = vsyncpa [#allocation5], 1 }

</bundles_post_ra>
